<compile_context>
chip_gen: v7x
topology: tpu7x:2x2x1
jax: 0.10.0
libtpu: 0.0.40
codegen_flags: <defaults>
</compile_context>

<pallas_src>
import jax
import jax.numpy as jnp
from jax.experimental import pallas as pl
from jax.experimental.pallas import tpu as pltpu

LANE = 128
SUBLANE_F32 = 8


def _round_up(x, m):
    return ((x + m - 1) // m) * m


def skipgram_kernel(x_ref, w1_ref, b1_ref, w2_ref, b2_ref, out_ref):
    # x_ref : (B_pad, E)  bf16 gathered embedding rows (resident).
    # w1_ref: (E, H)      bf16 (resident), b1_ref: (1, H) f32 (resident).
    # w2_ref: (H, tn)     bf16 tile of W2^T (streamed, double-buffered).
    # b2_ref: (1, tn)     bf16 tile of b2.
    # out_ref:(B_pad, tn) f32 output tile (lane-dense, unmasked store).
    #
    # Layer 1 + ReLU: recomputed per CV tile -- a tiny (B,E)x(E,H) GEMM fully
    # hidden under each W2 tile DMA; keeps the grid axis "parallel".
    h = jnp.dot(x_ref[...], w1_ref[...], preferred_element_type=jnp.float32)
    h = jnp.maximum(h + b1_ref[...], 0.0)                          # (B, H) f32

    # Layer 2: only this grid step's (H, tn) slice of W2 is resident.
    y = jnp.dot(h.astype(w2_ref.dtype), w2_ref[...],
                preferred_element_type=jnp.float32)
    out_ref[...] = y + b2_ref[...].astype(jnp.float32)             # (B, tn) f32


def prepare_skipgram_params(emb_table, w1, b1, w2, b2, *, tn_max=16384,
                            param_dtype=jnp.bfloat16):
    """One-time prep (outside the hot path).

    Transposes PyTorch (out,in) weights to (in,out), casts matmul operands to
    bf16, pads the C*V axis only to the minimal 128-lane-friendly size
    (tile width chosen to divide it, so big tiles don't stream zeros)."""
    V, E = emb_table.shape
    H = w1.shape[0]
    CV = w2.shape[0]

    cv128 = _round_up(CV, LANE)                 # minimal lane-dense width
    n_tiles = pl.cdiv(cv128, min(tn_max, cv128))
    tn = _round_up(pl.cdiv(cv128, n_tiles), LANE)   # divides cv_pad, <= tn_max+127
    cv_pad = n_tiles * tn                       # slack <= n_tiles*128 columns

    emb_bf = emb_table.astype(param_dtype)                              # (V, E)
    w1_t = w1.T.astype(param_dtype)                                     # (E, H)
    b1_2d = b1.reshape(1, H).astype(jnp.float32)                        # (1, H)
    w2_t = jnp.zeros((H, cv_pad), param_dtype).at[:, :CV].set(
        w2.T.astype(param_dtype))                                       # (H, cv_pad)
    b2_2d = jnp.zeros((1, cv_pad), param_dtype).at[:, :CV].set(
        b2.astype(param_dtype))                                         # (1, cv_pad)
    return dict(emb=emb_bf, w1_t=w1_t, b1=b1_2d, w2_t=w2_t, b2=b2_2d,
                tn=tn, n_tiles=n_tiles, cv=CV, cv_pad=cv_pad, vocab=V)


def _skipgram_batched_logits(idx, params):
    """idx: (B,) int32 token indices.  Returns (B, context_size*vocab) f32."""
    emb, w1_t, b1, w2_t, b2 = (params["emb"], params["w1_t"], params["b1"],
                               params["w2_t"], params["b2"])
    tn, n_tiles, cv, cv_pad = (params["tn"], params["n_tiles"],
                               params["cv"], params["cv_pad"])
    V, E = emb.shape
    H = w1_t.shape[1]

    B = idx.shape[0]
    b_pad = _round_up(max(B, 1), SUBLANE_F32)   # full f32 sublane groups

    # Clamp (an out-of-range index would otherwise become an OOB gather) and
    # pad the batch to b_pad rows.
    idx = jnp.clip(idx.astype(jnp.int32), 0, V - 1)
    idx = jnp.pad(idx, (0, b_pad - B))
    # Embedding lookup: a tiny (b_pad, E) bf16 row gather, done as wrapper
    # glue so the kernel can reuse each streamed W2 tile across the batch.
    # TODO(synk): move the gather in-kernel via manual per-row DMAs if a pure
    # in-kernel nn.Embedding is required; it is negligible HBM traffic.
    x = emb[idx]                                                    # (b_pad, E)

    cost = pl.CostEstimate(
        flops=2 * b_pad * (E * H * n_tiles + H * cv_pad),
        transcendentals=0,
        bytes_accessed=(x.size * x.dtype.itemsize
                        + w1_t.size * w1_t.dtype.itemsize
                        + b1.size * b1.dtype.itemsize
                        + w2_t.size * w2_t.dtype.itemsize
                        + b2.size * b2.dtype.itemsize
                        + b_pad * cv_pad * 4))

    out = pl.pallas_call(
        skipgram_kernel,
        out_shape=jax.ShapeDtypeStruct((b_pad, cv_pad), jnp.float32),
        grid_spec=pltpu.PrefetchScalarGridSpec(
            num_scalar_prefetch=0,
            grid=(n_tiles,),
            in_specs=[
                pl.BlockSpec((b_pad, E), lambda j: (0, 0)),   # gathered rows (resident)
                pl.BlockSpec((E, H), lambda j: (0, 0)),       # W1^T (resident)
                pl.BlockSpec((1, H), lambda j: (0, 0)),       # b1 (resident)
                pl.BlockSpec((H, tn), lambda j: (0, j)),      # W2^T tile (streamed)
                pl.BlockSpec((1, tn), lambda j: (0, j)),      # b2 tile (streamed)
            ],
            out_specs=pl.BlockSpec((b_pad, tn), lambda j: (0, j)),
        ),
        compiler_params=pltpu.CompilerParams(
            dimension_semantics=("parallel",),    # independent CV tiles (v7x 2 TC)
            vmem_limit_bytes=48 * 1024 * 1024),
        cost_estimate=cost,
    )(x, w1_t, b1, w2_t, b2)

    # Drop batch / lane padding -- pure glue.
    return out[:B, :cv]


def skipgram_forward(x_idx, params, context_size, vocab_size):
    """Module-faithful forward: x_idx (1,) -> (context_size, vocab_size) f32."""
    logits = _skipgram_batched_logits(x_idx.reshape(-1), params)
    return logits[0].reshape(context_size, vocab_size)


def skipgram_forward_batched(x_idx, params, context_size, vocab_size):
    """Throughput path: x_idx (B,) -> (B, context_size, vocab_size) f32."""
    logits = _skipgram_batched_logits(x_idx, params)
    return logits.reshape(-1, context_size, vocab_size)


if __name__ == "__main__":
    # Small, deterministic configuration.
    vocab_size = 16
    embedding_size = 32
    context_size = 4
    hidden = 128
    cv = context_size * vocab_size

    key = jax.random.PRNGKey(0)
    k_emb, k_w1, k_b1, k_w2, k_b2, k_x = jax.random.split(key, 6)

    # PyTorch weight convention: Linear weight is (out_features, in_features).
    emb_table = jax.random.normal(k_emb, (vocab_size, embedding_size), jnp.float32)
    w1 = jax.random.normal(k_w1, (hidden, embedding_size), jnp.float32) * 0.1
    b1 = jax.random.normal(k_b1, (hidden,), jnp.float32) * 0.1
    w2 = jax.random.normal(k_w2, (cv, hidden), jnp.float32) * 0.1
    b2 = jax.random.normal(k_b2, (cv,), jnp.float32) * 0.1

    params = prepare_skipgram_params(emb_table, w1, b1, w2, b2)

    # Pure-JAX reference with the same bf16 operand / f32 accumulate recipe.
    def ref_forward(idx):
        e = emb_table.astype(jnp.bfloat16)[idx]
        h = jnp.dot(e, w1.T.astype(jnp.bfloat16),
                    preferred_element_type=jnp.float32) + b1
        h = jnp.maximum(h, 0.0)
        y = jnp.dot(h.astype(jnp.bfloat16), w2.T.astype(jnp.bfloat16),
                    preferred_element_type=jnp.float32)
        return y + b2.astype(jnp.bfloat16).astype(jnp.float32)

    # 1) Single-token forward: exactly the module's semantics, (1,) -> (C, V).
    x_idx = jax.random.randint(k_x, (1,), 0, vocab_size, dtype=jnp.int32)
    out = jax.block_until_ready(
        skipgram_forward(x_idx, params, context_size, vocab_size))
    y_ref = ref_forward(x_idx[0]).reshape(context_size, vocab_size)
    assert out.shape == (context_size, vocab_size)
    assert jnp.allclose(out, y_ref, atol=5e-3, rtol=5e-3), \
        float(jnp.max(jnp.abs(out - y_ref)))

    # 2) Batched forward (the big throughput lever): (B,) -> (B, C, V).
    B = 8
    xb = jax.random.randint(k_x, (B,), 0, vocab_size, dtype=jnp.int32)
    outb = jax.block_until_ready(
        skipgram_forward_batched(xb, params, context_size, vocab_size))
    yb_ref = jax.vmap(ref_forward)(xb).reshape(B, context_size, vocab_size)
    assert outb.shape == (B, context_size, vocab_size)
    assert jnp.allclose(outb, yb_ref, atol=5e-3, rtol=5e-3), \
        float(jnp.max(jnp.abs(outb - yb_ref)))

    print("KERNEL_OK")
</pallas_src>

<mosaic_0001>
module attributes {stable_mosaic.version = 11 : i64} {
  func.func @skipgram_kernel(%arg0: i32, %arg1: memref<8x32xbf16, #tpu.memory_space<vmem>>, %arg2: memref<32x128xbf16, #tpu.memory_space<vmem>>, %arg3: memref<1x128xf32, #tpu.memory_space<vmem>>, %arg4: memref<128x128xbf16, #tpu.memory_space<vmem>>, %arg5: memref<1x128xbf16, #tpu.memory_space<vmem>>, %arg6: memref<8x128xf32, #tpu.memory_space<vmem>>) attributes {dimension_semantics = [#tpu.dimension_semantics<parallel>], iteration_bounds = array<i64: 1>, scalar_prefetch = 0 : i64, scratch_operands = 0 : i64, tpu.core_type = #tpu.core_type<tc>, window_params = [{pipeline_mode = #tpu.pipeline_mode<synchronous>, transform_indices = @transform_0, window_bounds = array<i64: 8, 32>}, {pipeline_mode = #tpu.pipeline_mode<synchronous>, transform_indices = @transform_1, window_bounds = array<i64: 32, 128>}, {pipeline_mode = #tpu.pipeline_mode<synchronous>, transform_indices = @transform_2, window_bounds = array<i64: 1, 128>}, {transform_indices = @transform_3, window_bounds = array<i64: 128, 128>}, {transform_indices = @transform_4, window_bounds = array<i64: 1, 128>}, {transform_indices = @transform_5, window_bounds = array<i64: 8, 128>}]} {
    %c0 = arith.constant 0 : index
    %c0_0 = arith.constant 0 : index
    %0 = vector.load %arg1[%c0, %c0_0] : memref<8x32xbf16, #tpu.memory_space<vmem>>, vector<8x32xbf16>
    %c0_1 = arith.constant 0 : index
    %c0_2 = arith.constant 0 : index
    %1 = vector.load %arg2[%c0_1, %c0_2] : memref<32x128xbf16, #tpu.memory_space<vmem>>, vector<32x128xbf16>
    %cst = arith.constant dense<0.000000e+00> : vector<8x128xf32>
    %2 = tpu.matmul %0, %1, %cst {dimension_numbers = #tpu.dot_dimension_numbers<[1], [0], [0], [1], [0, 0, 1, 1], [], []>} : vector<8x32xbf16>, vector<32x128xbf16>, vector<8x128xf32> -> vector<8x128xf32>
    %c0_3 = arith.constant 0 : index
    %c0_4 = arith.constant 0 : index
    %3 = vector.load %arg3[%c0_3, %c0_4] : memref<1x128xf32, #tpu.memory_space<vmem>>, vector<1x128xf32>
    %4 = vector.broadcast %3 : vector<1x128xf32> to vector<8x128xf32>
    %5 = arith.addf %2, %4 : vector<8x128xf32>
    %cst_5 = arith.constant 0.000000e+00 : f32
    %6 = vector.broadcast %cst_5 : f32 to vector<8x128xf32>
    %7 = arith.maximumf %5, %6 : vector<8x128xf32>
    %8 = arith.truncf %7 : vector<8x128xf32> to vector<8x128xbf16>
    %c0_6 = arith.constant 0 : index
    %c0_7 = arith.constant 0 : index
    %9 = vector.load %arg4[%c0_6, %c0_7] : memref<128x128xbf16, #tpu.memory_space<vmem>>, vector<128x128xbf16>
    %cst_8 = arith.constant dense<0.000000e+00> : vector<8x128xf32>
    %10 = tpu.matmul %8, %9, %cst_8 {dimension_numbers = #tpu.dot_dimension_numbers<[1], [0], [0], [1], [0, 0, 1, 1], [], []>} : vector<8x128xbf16>, vector<128x128xbf16>, vector<8x128xf32> -> vector<8x128xf32>
    %c0_9 = arith.constant 0 : index
    %c0_10 = arith.constant 0 : index
    %11 = vector.load %arg5[%c0_9, %c0_10] : memref<1x128xbf16, #tpu.memory_space<vmem>>, vector<1x128xbf16>
    %12 = arith.extf %11 : vector<1x128xbf16> to vector<1x128xf32>
    %13 = vector.broadcast %12 : vector<1x128xf32> to vector<8x128xf32>
    %14 = arith.addf %10, %13 : vector<8x128xf32>
    %c0_11 = arith.constant 0 : index
    %c0_12 = arith.constant 0 : index
    %15 = vector.load %arg6[%c0_11, %c0_12] : memref<8x128xf32, #tpu.memory_space<vmem>>, vector<8x128xf32>
    tpu.vector_store %arg6[%c0_11, %c0_12], %14 {strides = array<i32>} : memref<8x128xf32, #tpu.memory_space<vmem>>, vector<8x128xf32>,
    return
  }
  func.func @transform_0(%arg0: i32) -> (i32, i32) {
    %c0_i32 = arith.constant 0 : i32
    %c0_i32_0 = arith.constant 0 : i32
    %c0_i32_1 = arith.constant 0 : i32
    return %c0_i32, %c0_i32_0 : i32, i32
  }
  func.func @transform_1(%arg0: i32) -> (i32, i32) {
    %c0_i32 = arith.constant 0 : i32
    %c0_i32_0 = arith.constant 0 : i32
    %c0_i32_1 = arith.constant 0 : i32
    return %c0_i32, %c0_i32_0 : i32, i32
  }
  func.func @transform_2(%arg0: i32) -> (i32, i32) {
    %c0_i32 = arith.constant 0 : i32
    %c0_i32_0 = arith.constant 0 : i32
    %c0_i32_1 = arith.constant 0 : i32
    return %c0_i32, %c0_i32_0 : i32, i32
  }
  func.func @transform_3(%arg0: i32) -> (i32, i32) {
    %c0_i32 = arith.constant 0 : i32
    %c0_i32_0 = arith.constant 0 : i32
    return %c0_i32, %arg0 : i32, i32
  }
  func.func @transform_4(%arg0: i32) -> (i32, i32) {
    %c0_i32 = arith.constant 0 : i32
    %c0_i32_0 = arith.constant 0 : i32
    return %c0_i32, %arg0 : i32, i32
  }
  func.func @transform_5(%arg0: i32) -> (i32, i32) {
    %c0_i32 = arith.constant 0 : i32
    %c0_i32_0 = arith.constant 0 : i32
    return %c0_i32, %arg0 : i32, i32
  }
}

</mosaic_0001>

<bundles_post_ra>
// kernel: tpu_custom_call.1
= control target key start
LH: loop header
LB: loop body
LE: loop exit
PB: predicated region body
PF: predicated region fallthrough
CT: control target
= control target key end

     0   :  { %10 = vsyncpa [#allocation3], 0  ;;  %s520_s0 = inlined_call_operand.hbm [shape: bf16[8,32], index: 0, kind: input, shape index: {}]   ;;  %s521_s1 = inlined_call_operand.hbm [shape: bf16[32,128], index: 1, kind: input, shape index: {}]   ;;  %s522_s2 = inlined_call_operand.vmem [shape: f32[1,128], index: 2, kind: input, shape index: {}]   ;;  %s523_s3 = inlined_call_operand.hbm [shape: bf16[128,128], index: 3, kind: input, shape index: {}]   ;;  %s524_s4 = inlined_call_operand.vmem [shape: bf16[1,128], index: 4, kind: input, shape index: {}]   ;;  %s525_s5 = inlined_call_operand.hbm [shape: f32[8,128], index: 5, kind: output, shape index: {}]  }
   0x1   :  { %11 = vsyncpa [#allocation6], 0 }
   0x2   :  { %12 = vsyncpa [#allocation4], 0  ;;  %s422_s18 = smov [#allocation5]   ;;  %s328_s22 = scalar_lea.hbm %s521_s1, 256 }
   0x3   :  { %s28_s19 = sshll.u32 %s422_s18, 4  ;;  %p329_p0 = scmp.ne.s32.totalorder %s521_s1, %s328_s22  ;;  %s29_s19 = int_to_ptr.vmem [resolvable:$true] %s28_s19 }
   0x4   :  { %p332_p1 = scmp.lt.u32.totalorder %s328_s22, %s521_s1 }
   0x6   :  { %p334_p2 = pnand %p332_p1, %p329_p0 }
   0x8   :  { %337 = shalt.err (!%p334_p2)
}
   0x9   :  { %s338_s27 = scalar_lea.vmem %s29_s19, 256  ;;  %p343_p4 = scmp.lt.s32.totalorder %s29_s19, %s29_s19 }
   0xa   :  { %p339_p3 = scmp.ne.s32.totalorder %s29_s19, %s338_s27  ;;  %p344_p5 = scmp.lt.s32.totalorder %s338_s27, %s338_s27 }
   0xc   :  { %p345_p6 = por %p344_p5, %p343_p4 }
   0xe   :  { %p346_p7 = pnand %p345_p6, %p339_p3 }
  0x10   :  { %349 = shalt.err (!%p346_p7)
}
  0x11   :  { %s423_s28 = smov 64   ;;  %s424_s29 = smov 4  }
  0x12   :  { %34 = dma.hbm_to_vmem [thread:$0]  %s521_s1, 256, %s29_s19, [#allocation6], %s423_s28, %s423_s28, %s424_s29  }
  0x13   :  { %s425_s7 = smov [#allocation2]   ;;  %s426_s9 = smov [#allocation7]  }
  0x14   :  { %s19_s8 = sshll.u32 %s425_s7, 4  ;;  %s42_s10 = sshll.u32 %s426_s9, 4  ;;  %s20_s8 = int_to_ptr.vmem [resolvable:$true] %s19_s8  ;;  %s43_s10 = int_to_ptr.vmem [resolvable:$true] %s42_s10 }
  0x15   :  { %s350_s13 = scalar_lea.hbm %s520_s0, 64 }
  0x16   :  { %p351_p8 = scmp.ne.s32.totalorder %s520_s0, %s350_s13  ;;  %p354_p9 = scmp.lt.u32.totalorder %s350_s13, %s520_s0 }
  0x18   :  { %p356_p10 = pnand %p354_p9, %p351_p8 }
  0x1a   :  { %359 = shalt.err (!%p356_p10)
}
  0x1b   :  { %s360_s1 = scalar_lea.vmem %s20_s8, 64  ;;  %p365_p12 = scmp.lt.s32.totalorder %s20_s8, %s20_s8 }
  0x1c   :  { %p361_p11 = scmp.ne.s32.totalorder %s20_s8, %s360_s1  ;;  %p366_p13 = scmp.lt.s32.totalorder %s360_s1, %s360_s1 }
  0x1e   :  { %p367_p0 = por %p366_p13, %p365_p12 }
  0x20   :  { %p368_p1 = pnand %p367_p0, %p361_p11 }
  0x22   :  { %371 = shalt.err (!%p368_p1)
}
  0x23   :  { %22 = dma.hbm_to_vmem [thread:$0]  %s520_s0, 64, %s20_s8, [#allocation3]  }
  0x24   :  { %s372_s22 = scalar_lea.hbm %s523_s3, 1024 }
  0x25   :  { %p373_p2 = scmp.ne.s32.totalorder %s523_s3, %s372_s22  ;;  %p376_p3 = scmp.lt.u32.totalorder %s372_s22, %s523_s3 }
  0x27   :  { %p378_p4 = pnand %p376_p3, %p373_p2 }
  0x29   :  { %381 = shalt.err (!%p378_p4)
}
  0x2a   :  { %s382_s27 = scalar_lea.vmem %s43_s10, 1024  ;;  %p387_p6 = scmp.lt.s32.totalorder %s43_s10, %s43_s10 }
  0x2b   :  { %p383_p5 = scmp.ne.s32.totalorder %s43_s10, %s382_s27  ;;  %p388_p7 = scmp.lt.s32.totalorder %s382_s27, %s382_s27 }
  0x2d   :  { %p389_p8 = por %p388_p7, %p387_p6 }
  0x2f   :  { %p390_p9 = pnand %p389_p8, %p383_p5 }
  0x31   :  { %393 = shalt.err (!%p390_p9)
}
  0x32   :  { %48 = dma.hbm_to_vmem [thread:$0]  %s523_s3, 1024, %s43_s10, [#allocation6], %s423_s28, %s423_s28, %s424_s29  }
  0x33   :  { %416 = dma.done.wait [#allocation3], 64  }
  0x34   :  { %417 = vsyncadd [#allocation3], 4294967232 }
  0x35   :  { %418 = dma.done.wait [#allocation6], 1280  }
  0x36   :  { %419 = vsyncadd [#allocation6], 4294966016  ;;  %v427_v0 = vmov 0.0   ;;  %vm428_vm0 = vmmov 0   ;;  %v318_v1 = vld [vmem:[#allocation5] sm:$0xff]   ;;  %v319_v2 = vld [vmem:[#allocation5 + $0x8] sm:$0xff]   ;;  %v149_v20 = vlaneseq }
  0x37   :  { %282 = vmatprep.subr.bf16.mxu0 %v427_v0  ;;  %286 = vmatprep.mubr.msk.bf16.mxu0 %vm428_vm0, %v427_v0  ;;  %v320_v3 = vld [vmem:[#allocation7] sm:$0xff]   ;;  %vm85_vm1 = vcmask 261120   ;;  %v321_v4 = vld [vmem:[#allocation7 + $0x8] sm:$0xff]   ;;  %v322_v6 = vld [vmem:[#allocation7 + $0x10] sm:$0xff]   ;;  %s429_s7 = smov [#allocation8]  }
  0x38   :  { %290 = vmatprep.subr.bf16.mxu1 %v427_v0  ;;  %306 = vmatprep.mubr.msk.bf16.mxu1 %vm428_vm0, %v427_v0  ;;  %v61_v5 = vld [vmem:[#allocation2] sm:$0xf]  ;;  %v323_v7 = vld [vmem:[#allocation7 + $0x18] sm:$0xff]   ;;  %v324_v8 = vld [vmem:[#allocation7 + $0x20] sm:$0xff]   ;;  %v150_v21 = vshrl.u32 %v149_v20, 7  ;;  %s248_s8 = sshll.u32 %s429_s7, 4  ;;  %s249_s8 = int_to_ptr.vmem [resolvable:$true] %s248_s8 }
  0x39   :  { %283 = vmatpush3.bf16.msra.mxu0 %v318_v1  ;;  %291 = vmatpush3.bf16.msra.mxu1 %v320_v3  ;;  %v325_v9 = vld [vmem:[#allocation7 + $0x28] sm:$0xff]   ;;  %v326_v10 = vld [vmem:[#allocation7 + $0x30] sm:$0xff]   ;;  %v327_v11 = vld [vmem:[#allocation7 + $0x38] sm:$0xff]   ;;  %p399_p11 = scmp.lt.s32.totalorder %s249_s8, %s249_s8 }
  0x3a   :  { %284 = vmatprep.subr.bf16.mxu0 %v427_v0  ;;  %292 = vmatprep.subr.bf16.mxu1 %v427_v0  ;;  %v258_v12 = vld [vmem:[%s522_s2] ss:$0 sm:$0xff]  ;;  %v151_v24 = vsub.s32 0, %v150_v21  ;;  %s394_s2 = scalar_lea.vmem %s249_s8, 128 }
  0x3b   :  { %v147_v22 = vld [vmem:[%s524_s4] sm:$0x1]  ;;  %p395_p10 = scmp.ne.s32.totalorder %s249_s8, %s394_s2  ;;  %p400_p12 = scmp.lt.s32.totalorder %s394_s2, %s394_s2 }
  0x3c   :  { %v148_v23 = vunpack.c.l.bf16 %v147_v22 }
  0x3d   :  { %285 = vmatpush3.bf16.msra.mxu0 %v319_v2  ;;  %293 = vmatpush3.bf16.msra.mxu1 %v321_v4  ;;  %p401_p13 = por %p400_p12, %p399_p11 }
  0x3e   :  { %294 = vmatprep.subr.bf16.mxu1 %v427_v0  ;;  %v152_v25 = vrot.slane %v148_v23, %v151_v24 }
  0x3f   :  { %p402_p0 = pnand %p401_p13, %p395_p10 }
  0x40   :  { %287 = vmatmul.mubr.msk.bf16.vlgmr.msra.gmra.mrb[0].mxu0 %vm85_vm1, %v61_v5 }
  0x41   :  { %295 = vmatpush3.bf16.msra.mxu1 %v322_v6 }
  0x42   :  { %296 = vmatprep.subr.bf16.mxu1 %v427_v0 }
  0x45   :  { %297 = vmatpush3.bf16.msra.mxu1 %v323_v7 }
  0x46   :  { %298 = vmatprep.subr.bf16.mxu1 %v427_v0 }
  0x49   :  { %299 = vmatpush3.bf16.msra.mxu1 %v324_v8 }
  0x4a   :  { %300 = vmatprep.subr.bf16.mxu1 %v427_v0 }
  0x4d   :  { %301 = vmatpush3.bf16.msra.mxu1 %v325_v9 }
  0x4e   :  { %302 = vmatprep.subr.bf16.mxu1 %v427_v0 }
  0x51   :  { %303 = vmatpush3.bf16.msra.mxu1 %v326_v10 }
  0x52   :  { %304 = vmatprep.subr.bf16.mxu1 %v427_v0 }
  0x55   :  { %305 = vmatpush3.bf16.msra.mxu1 %v327_v11 }
 0x113   :  { %v123_v13 = vpop.f32.mrb[0].mxu0 }
 0x114   :  { %v124_v14 = vadd.f32 %v258_v12, %v123_v13  ;;  %v288_v15 = vpop.f32.mrb[1].mxu0 }
 0x115   :  { %v126_v16 = vpop.f32.mrb[2].mxu0 }
 0x116   :  { %v129_v17 = vmax.f32 %v124_v14, 0.0  ;;  %v289_v18 = vpop.f32.mrb[3].mxu0 }
 0x118   :  { %v130_v19 = vpack.c.bf16 %v129_v17, %v129_v17 }
 0x11a   :  { %307 = vmatmul.mubr.bf16.vlgmr.msra.gmra.mrb[0].mxu1 %v130_v19 }
 0x1ed   :  { %v235_v26 = vpop.f32.mrb[0].mxu1 }
 0x1ee   :  { %v236_v27 = vadd.f32 %v235_v26, %v152_v25  ;;  %v308_v28 = vpop.f32.mrb[1].mxu1 }
 0x1ef   :  { %v238_v29 = vpop.f32.mrb[2].mxu1 }
 0x1f0   :  { %241 = vst [vmem:[#allocation8] sm:$0xff] %v236_v27  ;;  %v309_v30 = vpop.f32.mrb[3].mxu1 }
 0x1f1   :  { %405 = shalt.err (!%p402_p0)
}
 0x1f2   :  { %s406_s10 = scalar_lea.hbm %s525_s5, 128 }
 0x1f3   :  { %p407_p1 = scmp.ne.s32.totalorder %s525_s5, %s406_s10  ;;  %p410_p2 = scmp.lt.u32.totalorder %s406_s10, %s525_s5 }
 0x1f5   :  { %p412_p3 = pnand %p410_p2, %p407_p1 }
 0x1f7   :  { %415 = shalt.err (!%p412_p3)
}
 0x1f8   :  { %251 = dma.vmem_to_hbm [thread:$0]  %s249_s8, 128, %s525_s5, [#allocation4]  }
 0x1f9   :  { %420 = dma.done.wait [#allocation4], 128  }
 0x1fa   :  { %421 = vsyncadd [#allocation4], 4294967168 }
 0x1fb   :  { %255 = vsyncpa [#allocation3], 1 }
 0x1fc   :  { %256 = vsyncpa [#allocation6], 1 }
 0x1fd   :  { %257 = vsyncpa [#allocation4], 1 }

</bundles_post_ra>
